<compile_context>
chip_gen: v6e
topology: v6e:2x2x1
jax: 0.10.0
libtpu: 0.0.40
codegen_flags: <defaults>
</compile_context>

<pallas_src>
import functools

import jax
import jax.numpy as jnp
import numpy as np
from jax.experimental import pallas as pl
from jax.experimental.pallas import tpu as pltpu


def _cdiv(a, b):
    return -(-a // b)


def _round_up(x, m):
    return ((x + m - 1) // m) * m


def iaf_spec_kernel(x_ref, icv_ref, m1_ref, o_ref, carry_ref, *, t_len):
    """One (row_tile, F_tile) output block; output column c holds fused frame c-1.

    x_ref    : (row_tile, TK)       f32       waveform slab, TK = F_tile * hop
    icv_ref  : (row_tile, 1)        f32       1 / CV per flattened (batch, neuron) row
    m1_ref   : (TK, F_tile)         bf16/f32  framing matrix M1[t, j] = (t // hop == j)
    o_ref    : (row_tile, F_tile)   f32       fused spectrogram block (lane-dense)
    carry_ref: (row_tile, 1)        f32       last frame sum of the previous frame tile
    """
    f = pl.program_id(1)
    tk = x_ref.shape[1]
    f_tile = o_ref.shape[1]

    @pl.when(f == 0)
    def _():
        carry_ref[...] = jnp.zeros_like(carry_ref)

    # clamp(|x|, 0, 0.5); zero samples past the real waveform length.  This replaces
    # the old wrapper-side pad and also kills NaN/garbage from the padded edge block
    # (jnp.where is a select, so NaN in the unselected branch cannot leak through).
    x = jnp.clip(jnp.abs(x_ref[...]), 0.0, 0.5)
    t_global = jax.lax.broadcasted_iota(jnp.int32, x.shape, 1) + f * tk
    x = jnp.where(t_global < t_len, x, 0.0)

    # Per-frame sums for frames [f*F_tile, (f+1)*F_tile): one MXU matmul against the
    # hoisted framing matrix (bf16 operands by default, f32 accumulation).
    a = jnp.dot(x.astype(m1_ref.dtype), m1_ref[...],
                preferred_element_type=jnp.float32)            # (row_tile, F_tile)

    # Fused adjacent-frame sum: out[:, c] = frames[c-1] + frames[c].  frames[c-1] for
    # the first column of this tile is the previous tile's last frame (VMEM carry).
    shifted = pltpu.roll(a, shift=1, axis=1)
    col0 = jax.lax.broadcasted_iota(jnp.int32, a.shape, 1) == 0
    prev = jnp.where(col0, carry_ref[...], shifted)
    carry_ref[...] = a[:, f_tile - 1:f_tile]

    o_ref[...] = ((prev + a) * icv_ref[...]).astype(o_ref.dtype)


def iaf_spec(waveform, cv, hop_length, overlap=False, *,
             row_tile=256, frame_tile=128, compute_dtype=jnp.bfloat16,
             max_x_block_bytes=8 * 1024 * 1024):
    """waveform: (B, N, T) float32, cv: (N,) float32.  Returns (B, 1, N, n_frames-1)."""
    del overlap  # overlap=True (win=2*hop, no adjacent add) gives the same fused windows.
    B, N, T = waveform.shape
    n_frames = _cdiv(T, hop_length)                       # ceil, matches torch _framing()
    assert n_frames >= 2, "need at least two frames"
    F_out = n_frames - 1

    F_tile = frame_tile                                   # lane-dense output tiles
    assert F_tile % 128 == 0
    TK = F_tile * hop_length                              # time slab per step, % 128 == 0
    num_f = _cdiv(n_frames, F_tile)                       # frame (== time) grid steps

    R = B * N
    x = waveform.astype(jnp.float32).reshape(R, T)        # free reshape, NO padding copy

    # Row tile: multiple of 8, capped by R and by a VMEM budget for the x block
    # (large hop => large TK => fewer rows per step).
    rt = min(row_tile, _round_up(R, 8))
    rt = max(8, min(rt, max(8, (max_x_block_bytes // (TK * 4)) // 8 * 8)))
    # TODO(synk): when B*N fits a single row tile, v7x's second TensorCore idles; a
    # 2-way time split plus a tiny combine pass would recover it.

    inv_cv = 1.0 / cv.astype(jnp.float32)                 # reciprocal hoisted to wrapper
    icv = jnp.broadcast_to(inv_cv[None, :], (B, N)).reshape(R, 1)

    # Framing matrix, hoisted out of the grid loop (constant index_map => DMA'd once).
    t_idx = jnp.arange(TK, dtype=jnp.int32)[:, None]
    j_idx = jnp.arange(F_tile, dtype=jnp.int32)[None, :]
    m1 = ((t_idx // hop_length) == j_idx).astype(compute_dtype)

    out = pl.pallas_call(
        functools.partial(iaf_spec_kernel, t_len=T),
        out_shape=jax.ShapeDtypeStruct((R, num_f * F_tile), jnp.float32),
        grid_spec=pltpu.PrefetchScalarGridSpec(
            num_scalar_prefetch=0,
            grid=(_cdiv(R, rt), num_f),
            in_specs=[
                pl.BlockSpec((rt, TK), lambda r, f: (r, f)),       # waveform slab
                pl.BlockSpec((rt, 1), lambda r, f: (r, 0)),        # 1/CV per row
                pl.BlockSpec((TK, F_tile), lambda r, f: (0, 0)),   # framing matrix (once)
            ],
            out_specs=pl.BlockSpec((rt, F_tile), lambda r, f: (r, f)),
            scratch_shapes=[pltpu.VMEM((rt, 1), jnp.float32)],     # carry frame
        ),
        compiler_params=pltpu.CompilerParams(
            dimension_semantics=("parallel", "arbitrary")),
    )(x, icv, m1)

    # Column c holds fused frame c-1: drop the dummy column 0 and the right padding.
    spec = out[:, 1:1 + F_out].reshape(B, N, F_out)
    return spec[:, None, :, :]                             # unsqueeze(1) -> (B,1,N,F_out)


def iaf_spec_reference(waveform, cv, hop_length, overlap=False):
    """Pure-JAX reference mirroring the PyTorch forward for both overlap modes."""
    B, N, T = waveform.shape
    n_frames = _cdiv(T, hop_length)
    pad = n_frames * hop_length - T
    x = jnp.clip(jnp.abs(waveform), 0.0, 0.5)
    x = jnp.pad(x, ((0, 0), (0, 0), (0, pad)))
    if overlap:
        win = 2 * hop_length
        n_win = (n_frames * hop_length - win) // hop_length + 1
        idx = jnp.arange(n_win)[:, None] * hop_length + jnp.arange(win)[None, :]
        frames = x[..., idx].sum(-1)                       # unfold(win=2*hop, step=hop)
        spec = frames / cv[None, :, None]
    else:
        frames = x.reshape(B, N, n_frames, hop_length).sum(-1)
        spec = frames / cv[None, :, None]
        spec = spec[..., :-1] + spec[..., 1:]
    return spec[:, None, :, :]


if __name__ == "__main__":
    # Small, module-consistent shapes; T not a multiple of hop exercises the ceil-pad
    # path, and R = B*N = 16 < row_tile exercises the partial edge-row block.
    B, n_neuron, T = 2, 8, 200
    hop_length = 16
    n_frames = _cdiv(T, hop_length)                        # 13 -> 12 fused frames

    key = jax.random.PRNGKey(0)
    waveform = jax.random.normal(key, (B, n_neuron, T), dtype=jnp.float32)

    # TODO(synk): AFE config-file read (C_spk, Vth) replaced by a fixed C*Vth = 0.25.
    cv = jnp.full((n_neuron,), 0.25, dtype=jnp.float32)

    ref = iaf_spec_reference(waveform, cv, hop_length, overlap=False)
    ref_ov = iaf_spec_reference(waveform, cv, hop_length, overlap=True)
    # overlap=True collapses to the same fused windows (review correctness concern).
    np.testing.assert_allclose(np.asarray(ref), np.asarray(ref_ov), rtol=1e-6, atol=1e-6)

    # Default bf16 MXU path (perf-review item): x quantized to 8-bit mantissa, so use
    # a correspondingly looser tolerance against the f32 reference.
    out = jax.block_until_ready(iaf_spec(waveform, cv, hop_length, overlap=False))
    assert out.shape == (B, 1, n_neuron, n_frames - 1), out.shape
    np.testing.assert_allclose(np.asarray(out), np.asarray(ref), rtol=2e-2, atol=2e-2)

    # f32 MXU path for precision-sensitive users: tight tolerance.
    out_f32 = jax.block_until_ready(
        iaf_spec(waveform, cv, hop_length, compute_dtype=jnp.float32))
    np.testing.assert_allclose(np.asarray(out_f32), np.asarray(ref), rtol=1e-5, atol=1e-5)

    print("KERNEL_OK")
</pallas_src>

<mosaic_0001>
module attributes {stable_mosaic.version = 11 : i64} {
  func.func @iaf_spec_kernel(%arg0: i32, %arg1: i32, %arg2: memref<16x2048xf32, #tpu.memory_space<vmem>>, %arg3: memref<16x1xf32, #tpu.memory_space<vmem>>, %arg4: memref<2048x128xbf16, #tpu.memory_space<vmem>>, %arg5: memref<16x128xf32, #tpu.memory_space<vmem>>, %arg6: memref<16x1xf32, #tpu.memory_space<vmem>>) attributes {dimension_semantics = [#tpu.dimension_semantics<parallel>, #tpu.dimension_semantics<arbitrary>], iteration_bounds = array<i64: 1, 1>, scalar_prefetch = 0 : i64, scratch_operands = 1 : i64, tpu.core_type = #tpu.core_type<tc>, window_params = [{transform_indices = @transform_0, window_bounds = array<i64: 16, 2048>}, {transform_indices = @transform_1, window_bounds = array<i64: 16, 1>}, {pipeline_mode = #tpu.pipeline_mode<synchronous>, transform_indices = @transform_2, window_bounds = array<i64: 2048, 128>}, {transform_indices = @transform_3, window_bounds = array<i64: 16, 128>}]} {
    %c0_i32 = arith.constant 0 : i32
    %0 = arith.cmpi eq, %arg1, %c0_i32 : i32
    %1 = arith.extui %0 : i1 to i32
    %c0_i32_0 = arith.constant 0 : i32
    %2 = arith.cmpi ne, %1, %c0_i32_0 : i32
    scf.if %2 {
      %cst_16 = arith.constant 0.000000e+00 : f32
      %35 = vector.broadcast %cst_16 : f32 to vector<16x1xf32>
      %c0_17 = arith.constant 0 : index
      %c0_18 = arith.constant 0 : index
      %36 = vector.load %arg6[%c0_17, %c0_18] : memref<16x1xf32, #tpu.memory_space<vmem>>, vector<16x1xf32>
      tpu.vector_store %arg6[%c0_17, %c0_18], %35 {strides = array<i32>} : memref<16x1xf32, #tpu.memory_space<vmem>>, vector<16x1xf32>,
    } else {
    }
    %c0 = arith.constant 0 : index
    %c0_1 = arith.constant 0 : index
    %3 = vector.load %arg2[%c0, %c0_1] : memref<16x2048xf32, #tpu.memory_space<vmem>>, vector<16x2048xf32>
    %4 = math.absf %3 : vector<16x2048xf32>
    %cst = arith.constant 0.000000e+00 : f32
    %cst_2 = arith.constant 5.000000e-01 : f32
    %5 = vector.broadcast %cst : f32 to vector<16x2048xf32>
    %6 = arith.maximumf %5, %4 : vector<16x2048xf32>
    %7 = vector.broadcast %cst_2 : f32 to vector<16x2048xf32>
    %8 = arith.minimumf %7, %6 : vector<16x2048xf32>
    %9 = tpu.iota {dimensions = array<i32: 1>} : vector<16x2048xi32>
    %c2048_i32 = arith.constant 2048 : i32
    %10 = arith.muli %arg1, %c2048_i32 : i32
    %11 = vector.broadcast %10 : i32 to vector<16x2048xi32>
    %12 = arith.addi %9, %11 : vector<16x2048xi32>
    %c200_i32 = arith.constant 200 : i32
    %13 = vector.broadcast %c200_i32 : i32 to vector<16x2048xi32>
    %14 = arith.cmpi slt, %12, %13 : vector<16x2048xi32>
    %cst_3 = arith.constant 0.000000e+00 : f32
    %15 = vector.broadcast %cst_3 : f32 to vector<16x2048xf32>
    %16 = arith.select %14, %8, %15 : vector<16x2048xi1>, vector<16x2048xf32>
    %17 = arith.truncf %16 : vector<16x2048xf32> to vector<16x2048xbf16>
    %c0_4 = arith.constant 0 : index
    %c0_5 = arith.constant 0 : index
    %18 = vector.load %arg4[%c0_4, %c0_5] : memref<2048x128xbf16, #tpu.memory_space<vmem>>, vector<2048x128xbf16>
    %cst_6 = arith.constant dense<0.000000e+00> : vector<16x128xf32>
    %19 = tpu.matmul %17, %18, %cst_6 {dimension_numbers = #tpu.dot_dimension_numbers<[1], [0], [0], [1], [0, 0, 1, 1], [], []>} : vector<16x2048xbf16>, vector<2048x128xbf16>, vector<16x128xf32> -> vector<16x128xf32>
    %c1_i32 = arith.constant 1 : i32
    %20 = tpu.dynamic_rotate %19 by %c1_i32 dim 1 : vector<16x128xf32>, i32 -> vector<16x128xf32>
    %21 = tpu.iota {dimensions = array<i32: 1>} : vector<16x128xi32>
    %c0_i32_7 = arith.constant 0 : i32
    %22 = vector.broadcast %c0_i32_7 : i32 to vector<16x128xi32>
    %23 = arith.cmpi eq, %21, %22 : vector<16x128xi32>
    %c0_8 = arith.constant 0 : index
    %c0_9 = arith.constant 0 : index
    %24 = vector.load %arg6[%c0_8, %c0_9] : memref<16x1xf32, #tpu.memory_space<vmem>>, vector<16x1xf32>
    %25 = vector.shape_cast %24 : vector<16x1xf32> to vector<16x1xf32>
    %26 = vector.broadcast %25 : vector<16x1xf32> to vector<16x128xf32>
    %27 = arith.select %23, %26, %20 : vector<16x128xi1>, vector<16x128xf32>
    %28 = vector.extract_strided_slice %19 {offsets = [0, 127], sizes = [16, 1], strides = [1, 1]} : vector<16x128xf32> to vector<16x1xf32>
    %c0_10 = arith.constant 0 : index
    %c0_11 = arith.constant 0 : index
    %29 = vector.load %arg6[%c0_10, %c0_11] : memref<16x1xf32, #tpu.memory_space<vmem>>, vector<16x1xf32>
    tpu.vector_store %arg6[%c0_10, %c0_11], %28 {strides = array<i32>} : memref<16x1xf32, #tpu.memory_space<vmem>>, vector<16x1xf32>,
    %30 = arith.addf %27, %19 : vector<16x128xf32>
    %c0_12 = arith.constant 0 : index
    %c0_13 = arith.constant 0 : index
    %31 = vector.load %arg3[%c0_12, %c0_13] : memref<16x1xf32, #tpu.memory_space<vmem>>, vector<16x1xf32>
    %32 = vector.broadcast %31 : vector<16x1xf32> to vector<16x128xf32>
    %33 = arith.mulf %30, %32 : vector<16x128xf32>
    %c0_14 = arith.constant 0 : index
    %c0_15 = arith.constant 0 : index
    %34 = vector.load %arg5[%c0_14, %c0_15] : memref<16x128xf32, #tpu.memory_space<vmem>>, vector<16x128xf32>
    tpu.vector_store %arg5[%c0_14, %c0_15], %33 {strides = array<i32>} : memref<16x128xf32, #tpu.memory_space<vmem>>, vector<16x128xf32>,
    return
  }
  func.func @transform_0(%arg0: i32, %arg1: i32) -> (i32, i32) {
    %c0_i32 = arith.constant 0 : i32
    return %arg0, %arg1 : i32, i32
  }
  func.func @transform_1(%arg0: i32, %arg1: i32) -> (i32, i32) {
    %c0_i32 = arith.constant 0 : i32
    %c0_i32_0 = arith.constant 0 : i32
    return %arg0, %c0_i32 : i32, i32
  }
  func.func @transform_2(%arg0: i32, %arg1: i32) -> (i32, i32) {
    %c0_i32 = arith.constant 0 : i32
    %c0_i32_0 = arith.constant 0 : i32
    %c0_i32_1 = arith.constant 0 : i32
    return %c0_i32, %c0_i32_0 : i32, i32
  }
  func.func @transform_3(%arg0: i32, %arg1: i32) -> (i32, i32) {
    %c0_i32 = arith.constant 0 : i32
    return %arg0, %arg1 : i32, i32
  }
}

</mosaic_0001>

<bundles_post_ra>
// kernel: tpu_custom_call.1
= control target key start
LH: loop header
LB: loop body
LE: loop exit
PB: predicated region body
PF: predicated region fallthrough
CT: control target
= control target key end

     0   :  { %8 = vsyncpa [#allocation4], 0  ;;  %s2286_s0 = inlined_call_operand.hbm [shape: f32[16,200], index: 0, kind: input, shape index: {}]   ;;  %s2287_s1 = inlined_call_operand.vmem [shape: f32[16,1], index: 1, kind: input, shape index: {}]   ;;  %s2288_s2 = inlined_call_operand.hbm [shape: bf16[2048,128], index: 2, kind: input, shape index: {}]   ;;  %s2289_s3 = inlined_call_operand.hbm [shape: f32[16,128], index: 3, kind: output, shape index: {}]  }
   0x1   :  { %9 = vsyncpa [#allocation7], 0 }
   0x2   :  { %10 = vsyncpa [#allocation5], 0 }
   0x3   :  { %15 = vsyncadd [#allocation4], 3584  ;;  %s2213_s12 = smov [#allocation3]  }
   0x4   :  { %s16_s13 = sshll.u32 %s2213_s12, 4  ;;  %s17_s13 = int_to_ptr.vmem [resolvable:$true] %s16_s13 }
   0x5   :  { %s2155_s14 = scalar_lea.vmem %s17_s13, 512  ;;  %s2159_s15 = scalar_lea.vmem %s17_s13, 4096 }
   0x6   :  { %p2156_p0 = scmp.ne.s32.totalorder %s17_s13, %s2155_s14  ;;  %p2160_p1 = scmp.lt.s32.totalorder %s17_s13, %s17_s13 }
   0x7   :  { %p2161_p2 = scmp.lt.s32.totalorder %s2159_s15, %s2155_s14 }
   0x9   :  { %p2162_p3 = por %p2161_p2, %p2160_p1 }
   0xb   :  { %p2163_p4 = pnand %p2162_p3, %p2156_p0 }
   0xd   :  { %2166 = shalt.err (!%p2163_p4)
}
   0xe   :  { %s2214_s16 = smov 256   ;;  %s2215_s17 = smov 2048  }
   0xf   :  { %s2216_s18 = smov 16   ;;  %s2217_s21 = smov [#allocation6]  }
  0x10   :  { %22 = dma.hbm_to_vmem [thread:$0]  %s2286_s0, 512, %s17_s13, [#allocation4], %s2214_s16, %s2215_s17, %s2216_s18  }
  0x11   :  { %s30_s22 = sshll.u32 %s2217_s21, 4  ;;  %s31_s22 = int_to_ptr.vmem [resolvable:$true] %s30_s22 }
  0x12   :  { %s2175_s23 = scalar_lea.vmem %s31_s22, 16384  ;;  %p2180_p6 = scmp.lt.s32.totalorder %s31_s22, %s31_s22 }
  0x13   :  { %p2176_p5 = scmp.ne.s32.totalorder %s31_s22, %s2175_s23  ;;  %p2181_p7 = scmp.lt.s32.totalorder %s2175_s23, %s2175_s23 }
  0x15   :  { %p2182_p8 = por %p2181_p7, %p2180_p6 }
  0x17   :  { %p2183_p9 = pnand %p2182_p8, %p2176_p5 }
  0x19   :  { %2186 = shalt.err (!%p2183_p9)
}
  0x1a   :  { %s2218_s24 = smov 64   ;;  %s2219_s25 = smov 4  }
  0x1b   :  { %36 = dma.hbm_to_vmem [thread:$0]  %s2288_s2, 16384, %s31_s22, [#allocation7], %s2218_s24, %s2218_s24, %s2219_s25  }
  0x1c   :  { %2207 = dma.done.wait [#allocation4], 4096  }
  0x1d   :  { %2208 = vsyncadd [#allocation4], 4294963200 }
  0x1e   :  { %2209 = dma.done.wait [#allocation7], 16384  }
  0x1f   :  { %2210 = vsyncadd [#allocation7], 4294950912  ;;  %v2220_v0 = vmov 0.0|0.0   ;;  %v2019_v1 = vld [vmem:[#allocation6 + $0x78] sm:$0xff]   ;;  %v2023_v5 = vld [vmem:[#allocation6 + $0x70] sm:$0xff]   ;;  %v179_v22 = vlaneseq  ;;  %vm48_vm2 = vcmask 7168  }
  0x20   :  { %1375 = vmatprep.mubr.bf16.mxu1 %v2220_v0  ;;  %v2020_v2 = vld [vmem:[#allocation6 + $0xf8] sm:$0xff]   ;;  %1827 = vmatprep.subr.bf16.mxu0 %v2019_v1  ;;  %v2024_v6 = vld [vmem:[#allocation6 + $0xf0] sm:$0xff]   ;;  %v2027_v9 = vld [vmem:[#allocation6 + $0x68] sm:$0xff]   ;;  %s2224_s30 = smov [#allocation8]  }
  0x21   :  { %v2021_v3 = vld [vmem:[#allocation6 + $0x38] sm:$0xff]   ;;  %1849 = vmatprep.subr.bf16.mxu1 %v2020_v2  ;;  %v2025_v7 = vld [vmem:[#allocation6 + $0x30] sm:$0xff]   ;;  %v2028_v10 = vld [vmem:[#allocation6 + $0xe8] sm:$0xff]   ;;  %v2254_v27 = vand.u32 127, %v179_v22  ;;  %s1683_s4 = sshll.u32 %s2224_s30, 4  ;;  %s1684_s4 = int_to_ptr.vmem [resolvable:$true] %s1683_s4 }
  0x22   :  { %v2022_v4 = vld [vmem:[#allocation6 + $0xb8] sm:$0xff]   ;;  %1828 = vmatpush3.bf16.msra.mxu0 %v2021_v3  ;;  %v2026_v8 = vld [vmem:[#allocation6 + $0xb0] sm:$0xff]   ;;  %v2029_v11 = vld [vmem:[#allocation6 + $0x28] sm:$0xff]   ;;  %s2187_s5 = scalar_lea.vmem %s1684_s4, 256  ;;  %p2192_p11 = scmp.lt.s32.totalorder %s1684_s4, %s1684_s4 }
  0x23   :  { %1850 = vmatpush3.bf16.msra.mxu1 %v2022_v4  ;;  %1829 = vmatprep.subr.bf16.mxu0 %v2023_v5  ;;  %v2030_v12 = vld [vmem:[#allocation6 + $0xa8] sm:$0xff]   ;;  %v2031_v13 = vld [vmem:[#allocation6 + $0x60] sm:$0xff]   ;;  %v2035_v17 = vld [vmem:[#allocation6 + $0x58] sm:$0xff]   ;;  %v181_v32 = vadd.s32 128, %v2254_v27  ;;  %vm1634_vm3 = vcmp.eq.s32.totalorder %v2254_v27, 0  ;;  %p2188_p10 = scmp.ne.s32.totalorder %s1684_s4, %s2187_s5  ;;  %p2193_p12 = scmp.lt.s32.totalorder %s2187_s5, %s2187_s5 }
  0x24   :  { %1851 = vmatprep.subr.bf16.mxu1 %v2024_v6  ;;  %v2032_v14 = vld [vmem:[#allocation6 + $0xe0] sm:$0xff]   ;;  %v2036_v18 = vld [vmem:[#allocation6 + $0xd8] sm:$0xff]   ;;  %v2039_v21 = vld [vmem:[#allocation6 + $0x50] sm:$0xff]  }
  0x25   :  { %v2033_v15 = vld [vmem:[#allocation6 + $0x20] sm:$0xff]   ;;  %v2037_v19 = vld [vmem:[#allocation6 + $0x18] sm:$0xff]   ;;  %v2040_v23 = vld [vmem:[#allocation6 + $0xd0] sm:$0xff]   ;;  %vm215_vm0 = vcmp.lt.s32.totalorder %v181_v32, 200  ;;  %p2194_p13 = por %p2193_p12, %p2192_p11 }
  0x26   :  { %1830 = vmatpush3.bf16.msra.mxu0 %v2025_v7  ;;  %v2034_v16 = vld [vmem:[#allocation6 + $0xa0] sm:$0xff]   ;;  %v2038_v20 = vld [vmem:[#allocation6 + $0x98] sm:$0xff]   ;;  %v2041_v24 = vld [vmem:[#allocation6 + $0x10] sm:$0xff]  }
  0x27   :  { %1852 = vmatpush3.bf16.msra.mxu1 %v2026_v8  ;;  %1831 = vmatprep.subr.bf16.mxu0 %v2027_v9  ;;  %v2042_v25 = vld [vmem:[#allocation6 + $0x90] sm:$0xff]   ;;  %v2043_v26 = vld [vmem:[#allocation6 + $0x48] sm:$0xff]   ;;  %v2047_v31 = vld [vmem:[#allocation6 + $0x40] sm:$0xff]   ;;  %p2195_p0 = pnand %p2194_p13, %p2188_p10 }
  0x28   :  { %1853 = vmatprep.subr.bf16.mxu1 %v2028_v10  ;;  %v2044_v28 = vld [vmem:[#allocation6 + $0xc8] sm:$0xff]   ;;  %v2048_v33 = vld [vmem:[#allocation6 + $0xc0] sm:$0xff]   ;;  %v2051_v46 = vld [vmem:[#allocation6 + $0x178] sm:$0xff]  }
  0x29   :  { %v2045_v29 = vld [vmem:[#allocation6 + $0x8] sm:$0xff]   ;;  %v2049_v34 = vld [vmem:[#allocation6] sm:$0xff]   ;;  %v2052_v47 = vld [vmem:[#allocation6 + $0x1f8] sm:$0xff]  }
  0x2a   :  { %1832 = vmatpush3.bf16.msra.mxu0 %v2029_v11  ;;  %v2046_v30 = vld [vmem:[#allocation6 + $0x88] sm:$0xff]   ;;  %v2050_v35 = vld [vmem:[#allocation6 + $0x80] sm:$0xff]   ;;  %vm1824_vm1 = vmpackc.low %vm215_vm0, %vm215_vm0 }
  0x2b   :  { %1854 = vmatpush3.bf16.msra.mxu1 %v2030_v12  ;;  %1833 = vmatprep.subr.bf16.mxu0 %v2031_v13  ;;  %v52_v36 = vld [vmem:[#allocation3 + $0x8] sm:$0xff]  ;;  %v51_v40 = vld [vmem:[#allocation3] sm:$0xff]  ;;  %v2053_v54 = vld [vmem:[#allocation6 + $0x138] sm:$0xff]  }
  0x2c   :  { %1855 = vmatprep.subr.bf16.mxu1 %v2032_v14  ;;  %v68_v37 = vld [vmem:[#allocation3 + $0x88] sm:$0xff]  ;;  %v84_v38 = vand.u32 2147483647, %v52_v36  ;;  %v67_v41 = vld [vmem:[#allocation3 + $0x80] sm:$0xff]  ;;  %v83_v42 = vand.u32 2147483647, %v51_v40 }
  0x2d   :  { %v100_v39 = vand.u32 2147483647, %v68_v37  ;;  %v99_v43 = vand.u32 2147483647, %v67_v41  ;;  %v2054_v55 = vld [vmem:[#allocation6 + $0x1b8] sm:$0xff]   ;;  %v2055_v58 = vld [vmem:[#allocation6 + $0x170] sm:$0xff]  }
  0x2e   :  { %1834 = vmatpush3.bf16.msra.mxu0 %v2033_v15  ;;  %v116_v44 = vmax.f32 %v84_v38, 0.0  ;;  %v115_v48 = vmax.f32 %v83_v42, 0.0  ;;  %v2056_v59 = vld [vmem:[#allocation6 + $0x1f0] sm:$0xff]   ;;  %v2059_v62 = vld [vmem:[#allocation6 + $0x168] sm:$0xff]   ;;  %v2063_v3 = vld [vmem:[#allocation6 + $0x160] sm:$0xff]  }
  0x2f   :  { %1856 = vmatpush3.bf16.msra.mxu1 %v2034_v16  ;;  %1835 = vmatprep.subr.bf16.mxu0 %v2035_v17  ;;  %v132_v45 = vmax.f32 %v100_v39, 0.0  ;;  %v131_v49 = vmax.f32 %v99_v43, 0.0  ;;  %v2057_v60 = vld [vmem:[#allocation6 + $0x130] sm:$0xff]   ;;  %v2060_v63 = vld [vmem:[#allocation6 + $0x1e8] sm:$0xff]   ;;  %v2064_v4 = vld [vmem:[#allocation6 + $0x1e0] sm:$0xff]  }
  0x30   :  { %1857 = vmatprep.subr.bf16.mxu1 %v2036_v18  ;;  %v148_v50 = vmin.f32 %v116_v44, 0.5  ;;  %v147_v52 = vmin.f32 %v115_v48, 0.5  ;;  %v2058_v61 = vld [vmem:[#allocation6 + $0x1b0] sm:$0xff]   ;;  %v2061_v1 = vld [vmem:[#allocation6 + $0x128] sm:$0xff]   ;;  %v2065_v5 = vld [vmem:[#allocation6 + $0x120] sm:$0xff]  }
  0x31   :  { %v164_v51 = vmin.f32 %v132_v45, 0.5  ;;  %v163_v53 = vmin.f32 %v131_v49, 0.5  ;;  %v2062_v2 = vld [vmem:[#allocation6 + $0x1a8] sm:$0xff]   ;;  %v2066_v6 = vld [vmem:[#allocation6 + $0x1a0] sm:$0xff]   ;;  %v2067_v7 = vld [vmem:[#allocation6 + $0x158] sm:$0xff]  }
  0x32   :  { %1836 = vmatpush3.bf16.msra.mxu0 %v2037_v19  ;;  %v2068_v8 = vld [vmem:[#allocation6 + $0x1d8] sm:$0xff]   ;;  %v2071_v11 = vld [vmem:[#allocation6 + $0x150] sm:$0xff]   ;;  %v2075_v15 = vld [vmem:[#allocation6 + $0x148] sm:$0xff]  }
  0x33   :  { %1858 = vmatpush3.bf16.msra.mxu1 %v2038_v20  ;;  %1837 = vmatprep.subr.bf16.mxu0 %v2039_v21  ;;  %v1825_v56 = vpack.c.bf16 %v164_v51, %v148_v50  ;;  %v262_v57 = vpack.c.bf16 %v163_v53, %v147_v52  ;;  %v2069_v9 = vld [vmem:[#allocation6 + $0x118] sm:$0xff]   ;;  %v2072_v12 = vld [vmem:[#allocation6 + $0x1d0] sm:$0xff]   ;;  %v2076_v16 = vld [vmem:[#allocation6 + $0x1c8] sm:$0xff]  }
  0x34   :  { %1859 = vmatprep.subr.bf16.mxu1 %v2040_v23  ;;  %v2070_v10 = vld [vmem:[#allocation6 + $0x198] sm:$0xff]   ;;  %v2073_v13 = vld [vmem:[#allocation6 + $0x110] sm:$0xff]   ;;  %v2077_v17 = vld [vmem:[#allocation6 + $0x108] sm:$0xff]  }
  0x35   :  { %1826 = vmatprep.mubr.msk.bf16.mxu0 %vm1824_vm1, %v1825_v56  ;;  %v2074_v14 = vld [vmem:[#allocation6 + $0x190] sm:$0xff]   ;;  %v2078_v18 = vld [vmem:[#allocation6 + $0x188] sm:$0xff]   ;;  %v2079_v19 = vld [vmem:[#allocation6 + $0x140] sm:$0xff]  }
  0x36   :  { %1838 = vmatpush3.bf16.msra.mxu0 %v2041_v24  ;;  %v2080_v20 = vld [vmem:[#allocation6 + $0x1c0] sm:$0xff]   ;;  %v2083_v23 = vld [vmem:[#allocation6 + $0x278] sm:$0xff]   ;;  %v2091_v32 = vld [vmem:[#allocation6 + $0x268] sm:$0xff]  }
  0x37   :  { %1860 = vmatpush3.bf16.msra.mxu1 %v2042_v25  ;;  %1839 = vmatprep.subr.bf16.mxu0 %v2043_v26  ;;  %v2081_v21 = vld [vmem:[#allocation6 + $0x100] sm:$0xff]   ;;  %v2084_v24 = vld [vmem:[#allocation6 + $0x2f8] sm:$0xff]   ;;  %v2103_v44 = vld [vmem:[#allocation6 + $0x250] sm:$0xff]  }
  0x38   :  { %1861 = vmatprep.subr.bf16.mxu1 %v2044_v28  ;;  %v2082_v22 = vld [vmem:[#allocation6 + $0x180] sm:$0xff]   ;;  %v2085_v25 = vld [vmem:[#allocation6 + $0x238] sm:$0xff]   ;;  %v2087_v28 = vld [vmem:[#allocation6 + $0x270] sm:$0xff]  }
  0x39   :  { %v2086_v26 = vld [vmem:[#allocation6 + $0x2b8] sm:$0xff]   ;;  %v2095_v36 = vld [vmem:[#allocation6 + $0x260] sm:$0xff]   ;;  %v2104_v45 = vld [vmem:[#allocation6 + $0x2d0] sm:$0xff]  }
  0x3a   :  { %1840 = vmatpush3.bf16.msra.mxu0 %v2045_v29  ;;  %v2088_v29 = vld [vmem:[#allocation6 + $0x2f0] sm:$0xff]   ;;  %v2096_v37 = vld [vmem:[#allocation6 + $0x2e0] sm:$0xff]   ;;  %v2099_v40 = vld [vmem:[#allocation6 + $0x258] sm:$0xff]  }
  0x3b   :  { %1862 = vmatpush3.bf16.msra.mxu1 %v2046_v30  ;;  %1841 = vmatprep.subr.bf16.mxu0 %v2047_v31  ;;  %v2089_v30 = vld [vmem:[#allocation6 + $0x230] sm:$0xff]   ;;  %v2097_v38 = vld [vmem:[#allocation6 + $0x220] sm:$0xff]   ;;  %v2100_v41 = vld [vmem:[#allocation6 + $0x2d8] sm:$0xff]  }
  0x3c   :  { %1863 = vmatprep.subr.bf16.mxu1 %v2048_v33  ;;  %v2090_v31 = vld [vmem:[#allocation6 + $0x2b0] sm:$0xff]   ;;  %v2092_v33 = vld [vmem:[#allocation6 + $0x2e8] sm:$0xff]   ;;  %v2098_v39 = vld [vmem:[#allocation6 + $0x2a0] sm:$0xff]  }
  0x3d   :  { %v2101_v42 = vld [vmem:[#allocation6 + $0x218] sm:$0xff]   ;;  %v2107_v48 = vld [vmem:[#allocation6 + $0x248] sm:$0xff]   ;;  %v2111_v52 = vld [vmem:[#allocation6 + $0x240] sm:$0xff]  }
  0x3e   :  { %1842 = vmatpush3.bf16.msra.mxu0 %v2049_v34  ;;  %v2093_v34 = vld [vmem:[#allocation6 + $0x228] sm:$0xff]   ;;  %v2102_v43 = vld [vmem:[#allocation6 + $0x298] sm:$0xff]   ;;  %v2112_v53 = vld [vmem:[#allocation6 + $0x2c0] sm:$0xff]  }
  0x3f   :  { %1864 = vmatpush3.bf16.msra.mxu1 %v2050_v35  ;;  %1871 = vmatprep.subr.bf16.mxu0 %v2051_v46  ;;  %v2094_v35 = vld [vmem:[#allocation6 + $0x2a8] sm:$0xff]   ;;  %v2105_v46 = vld [vmem:[#allocation6 + $0x210] sm:$0xff]   ;;  %v2115_v56 = vld [vmem:[#allocation6 + $0x378] sm:$0xff]  }
  0x40   :  { %1893 = vmatprep.subr.bf16.mxu1 %v2052_v47  ;;  %v2106_v47 = vld [vmem:[#allocation6 + $0x290] sm:$0xff]   ;;  %v2108_v49 = vld [vmem:[#allocation6 + $0x2c8] sm:$0xff]  }
  0x41   :  { %1335 = vmatmul.mubr.bf16.vlgmr.msra.gmra.mxu0 %v262_v57  ;;  %v2109_v50 = vld [vmem:[#allocation6 + $0x208] sm:$0xff]   ;;  %v2116_v57 = vld [vmem:[#allocation6 + $0x3f8] sm:$0xff]  }
  0x42   :  { %1376 = vmatmul.mubr.bf16.vlgmr.msra.gmra.mxu1 %v2220_v0  ;;  %1872 = vmatpush3.bf16.msra.mxu0 %v2053_v54  ;;  %v2110_v51 = vld [vmem:[#allocation6 + $0x288] sm:$0xff]   ;;  %v2113_v54 = vld [vmem:[#allocation6 + $0x200] sm:$0xff]  }
  0x43   :  { %1457 = vmatprep.mubr.bf16.mxu1 %v2220_v0  ;;  %1894 = vmatpush3.bf16.msra.mxu1 %v2054_v55  ;;  %v2114_v55 = vld [vmem:[#allocation6 + $0x280] sm:$0xff]  }
  0x44   :  { %1895 = vmatprep.subr.bf16.mxu1 %v2056_v59  ;;  %1873 = vmatprep.subr.bf16.mxu0 %v2055_v58  ;;  %v2117_v58 = vld [vmem:[#allocation6 + $0x338] sm:$0xff]  }
  0x45   :  { %1416 = vmatprep.mubr.bf16.mxu0 %v2220_v0  ;;  %v2118_v59 = vld [vmem:[#allocation6 + $0x3b8] sm:$0xff]  }
  0x46   :  { %1874 = vmatpush3.bf16.msra.mxu0 %v2057_v60  ;;  %v2119_v60 = vld [vmem:[#allocation6 + $0x370] sm:$0xff]  }
  0x47   :  { %1896 = vmatpush3.bf16.msra.mxu1 %v2058_v61  ;;  %1875 = vmatprep.subr.bf16.mxu0 %v2059_v62  ;;  %v2120_v61 = vld [vmem:[#allocation6 + $0x3f0] sm:$0xff]  }
  0x48   :  { %1897 = vmatprep.subr.bf16.mxu1 %v2060_v63  ;;  %v2121_v62 = vld [vmem:[#allocation6 + $0x330] sm:$0xff]  }
  0x49   :  { %v2122_v63 = vld [vmem:[#allocation6 + $0x3b0] sm:$0xff]  }
  0x4a   :  { %1876 = vmatpush3.bf16.msra.mxu0 %v2061_v1  ;;  %v2123_v1 = vld [vmem:[#allocation6 + $0x368] sm:$0xff]  }
  0x4b   :  { %1898 = vmatpush3.bf16.msra.mxu1 %v2062_v2  ;;  %1877 = vmatprep.subr.bf16.mxu0 %v2063_v3  ;;  %v2124_v2 = vld [vmem:[#allocation6 + $0x3e8] sm:$0xff]  }
  0x4c   :  { %1899 = vmatprep.subr.bf16.mxu1 %v2064_v4  ;;  %v2125_v3 = vld [vmem:[#allocation6 + $0x328] sm:$0xff]  }
  0x4d   :  { %v2126_v4 = vld [vmem:[#allocation6 + $0x3a8] sm:$0xff]  }
  0x4e   :  { %1878 = vmatpush3.bf16.msra.mxu0 %v2065_v5  ;;  %v2127_v5 = vld [vmem:[#allocation6 + $0x360] sm:$0xff]  }
  0x4f   :  { %1900 = vmatpush3.bf16.msra.mxu1 %v2066_v6  ;;  %1879 = vmatprep.subr.bf16.mxu0 %v2067_v7  ;;  %v2128_v6 = vld [vmem:[#allocation6 + $0x3e0] sm:$0xff]  }
  0x50   :  { %1901 = vmatprep.subr.bf16.mxu1 %v2068_v8  ;;  %v2129_v7 = vld [vmem:[#allocation6 + $0x320] sm:$0xff]  }
  0x51   :  { %v2130_v8 = vld [vmem:[#allocation6 + $0x3a0] sm:$0xff]  }
  0x52   :  { %1880 = vmatpush3.bf16.msra.mxu0 %v2069_v9  ;;  %v2131_v9 = vld [vmem:[#allocation6 + $0x358] sm:$0xff]  }
  0x53   :  { %1902 = vmatpush3.bf16.msra.mxu1 %v2070_v10  ;;  %1881 = vmatprep.subr.bf16.mxu0 %v2071_v11  ;;  %v2132_v10 = vld [vmem:[#allocation6 + $0x3d8] sm:$0xff]  }
  0x54   :  { %1903 = vmatprep.subr.bf16.mxu1 %v2072_v12  ;;  %v2133_v11 = vld [vmem:[#allocation6 + $0x318] sm:$0xff]  }
  0x55   :  { %v2134_v12 = vld [vmem:[#allocation6 + $0x398] sm:$0xff]  }
  0x56   :  { %1882 = vmatpush3.bf16.msra.mxu0 %v2073_v13  ;;  %v2135_v13 = vld [vmem:[#allocation6 + $0x350] sm:$0xff]  }
  0x57   :  { %1904 = vmatpush3.bf16.msra.mxu1 %v2074_v14  ;;  %1883 = vmatprep.subr.bf16.mxu0 %v2075_v15  ;;  %v2136_v14 = vld [vmem:[#allocation6 + $0x3d0] sm:$0xff]  }
  0x58   :  { %1905 = vmatprep.subr.bf16.mxu1 %v2076_v16  ;;  %v2137_v15 = vld [vmem:[#allocation6 + $0x310] sm:$0xff]  }
  0x59   :  { %v2138_v16 = vld [vmem:[#allocation6 + $0x390] sm:$0xff]  }
  0x5a   :  { %1884 = vmatpush3.bf16.msra.mxu0 %v2077_v17  ;;  %v2139_v17 = vld [vmem:[#allocation6 + $0x348] sm:$0xff]  }
  0x5b   :  { %1906 = vmatpush3.bf16.msra.mxu1 %v2078_v18  ;;  %1885 = vmatprep.subr.bf16.mxu0 %v2079_v19  ;;  %v2140_v18 = vld [vmem:[#allocation6 + $0x3c8] sm:$0xff]  }
  0x5c   :  { %1907 = vmatprep.subr.bf16.mxu1 %v2080_v20  ;;  %v2141_v19 = vld [vmem:[#allocation6 + $0x308] sm:$0xff]  }
  0x5d   :  { %v2142_v20 = vld [vmem:[#allocation6 + $0x388] sm:$0xff]  }
  0x5e   :  { %1886 = vmatpush3.bf16.msra.mxu0 %v2081_v21  ;;  %v2143_v21 = vld [vmem:[#allocation6 + $0x340] sm:$0xff]  }
  0x5f   :  { %1908 = vmatpush3.bf16.msra.mxu1 %v2082_v22  ;;  %1915 = vmatprep.subr.bf16.mxu0 %v2083_v23  ;;  %v2144_v22 = vld [vmem:[#allocation6 + $0x3c0] sm:$0xff]  }
  0x60   :  { %1937 = vmatprep.subr.bf16.mxu1 %v2084_v24  ;;  %v2145_v23 = vld [vmem:[#allocation6 + $0x300] sm:$0xff]  }
  0x61   :  { %1417 = vmatmul.mubr.bf16.vlgmr.msra.gmra.mxu0 %v2220_v0  ;;  %v2146_v24 = vld [vmem:[#allocation6 + $0x380] sm:$0xff]  }
  0x62   :  { %1458 = vmatmul.mubr.bf16.vlgmr.msra.gmra.mxu1 %v2220_v0  ;;  %1916 = vmatpush3.bf16.msra.mxu0 %v2085_v25  ;;  %v1662_v25 = vld [vmem:[%s2287_s1] sm:$0xff] }
  0x63   :  { %1938 = vmatpush3.bf16.msra.mxu1 %v2086_v26  ;;  %1539 = vmatprep.mubr.bf16.mxu1 %v2220_v0  ;;  %v2221_v26 = vmov 0  }
  0x64   :  { %1939 = vmatprep.subr.bf16.mxu1 %v2088_v29  ;;  %1917 = vmatprep.subr.bf16.mxu0 %v2087_v28  ;;  %v2222_v28 = vmov 0.0   ;;  %v1663_v29 = vld [vmem:[%s2287_s1 + $0x8] sm:$0xff]  ;;  %s2223_s1 = smov 1  }
  0x65   :  { %1498 = vmatprep.mubr.bf16.mxu0 %v2220_v0  ;;  %2018 = vset.pattern.permute.xlu0 %v2221_v26  ;;  %49 = vst.msk [vmem:[#allocation2] sm:$0xff] %vm48_vm2, %v2222_v28  ;;  %50 = vst.msk [vmem:[#allocation2 + $0x8] sm:$0xff] %vm48_vm2, %v2222_v28 }
  0x66   :  { %1918 = vmatpush3.bf16.msra.mxu0 %v2089_v30  ;;  %2017 = vset.pattern.permute.xlu1 %v2221_v26 }
  0x67   :  { %1940 = vmatpush3.bf16.msra.mxu1 %v2090_v31  ;;  %1919 = vmatprep.subr.bf16.mxu0 %v2091_v32 }
  0x68   :  { %1941 = vmatprep.subr.bf16.mxu1 %v2092_v33  ;;  %1666 = vperm.xlu1 %2017, %v1662_v25  }
  0x6a   :  { %1920 = vmatpush3.bf16.msra.mxu0 %v2093_v34 }
  0x6b   :  { %1942 = vmatpush3.bf16.msra.mxu1 %v2094_v35  ;;  %1921 = vmatprep.subr.bf16.mxu0 %v2095_v36 }
  0x6c   :  { %1943 = vmatprep.subr.bf16.mxu1 %v2096_v37  ;;  %1671 = vperm.xlu1 %2017, %v1663_v29   ;;  %v1636_v30 = vld [vmem:[#allocation2 + $0x8] sm:$0xff] }
  0x6e   :  { %1922 = vmatpush3.bf16.msra.mxu0 %v2097_v38 }
  0x6f   :  { %1944 = vmatpush3.bf16.msra.mxu1 %v2098_v39  ;;  %1923 = vmatprep.subr.bf16.mxu0 %v2099_v40 }
  0x70   :  { %1945 = vmatprep.subr.bf16.mxu1 %v2100_v41 }
  0x72   :  { %1924 = vmatpush3.bf16.msra.mxu0 %v2101_v42 }
  0x73   :  { %1946 = vmatpush3.bf16.msra.mxu1 %v2102_v43  ;;  %1925 = vmatprep.subr.bf16.mxu0 %v2103_v44 }
  0x74   :  { %1947 = vmatprep.subr.bf16.mxu1 %v2104_v45 }
  0x76   :  { %1926 = vmatpush3.bf16.msra.mxu0 %v2105_v46 }
  0x77   :  { %1948 = vmatpush3.bf16.msra.mxu1 %v2106_v47  ;;  %1927 = vmatprep.subr.bf16.mxu0 %v2107_v48 }
  0x78   :  { %1949 = vmatprep.subr.bf16.mxu1 %v2108_v49 }
  0x7a   :  { %1928 = vmatpush3.bf16.msra.mxu0 %v2109_v50 }
  0x7b   :  { %1950 = vmatpush3.bf16.msra.mxu1 %v2110_v51  ;;  %1929 = vmatprep.subr.bf16.mxu0 %v2111_v52 }
  0x7c   :  { %1951 = vmatprep.subr.bf16.mxu1 %v2112_v53 }
  0x7e   :  { %1930 = vmatpush3.bf16.msra.mxu0 %v2113_v54 }
  0x7f   :  { %1952 = vmatpush3.bf16.msra.mxu1 %v2114_v55  ;;  %1959 = vmatprep.subr.bf16.mxu0 %v2115_v56 }
  0x80   :  { %1981 = vmatprep.subr.bf16.mxu1 %v2116_v57 }
  0x81   :  { %1499 = vmatmul.mubr.bf16.vlgmr.msra.gmra.mxu0 %v2220_v0 }
  0x82   :  { %1540 = vmatmul.mubr.bf16.vlgmr.msra.gmra.mxu1 %v2220_v0  ;;  %1960 = vmatpush3.bf16.msra.mxu0 %v2117_v58 }
  0x83   :  { %1982 = vmatpush3.bf16.msra.mxu1 %v2118_v59  ;;  %1621 = vmatprep.mubr.bf16.mxu1 %v2220_v0 }
  0x84   :  { %1983 = vmatprep.subr.bf16.mxu1 %v2120_v61  ;;  %1961 = vmatprep.subr.bf16.mxu0 %v2119_v60 }
  0x85   :  { %1580 = vmatprep.mubr.bf16.mxu0 %v2220_v0 }
  0x86   :  { %1962 = vmatpush3.bf16.msra.mxu0 %v2121_v62 }
  0x87   :  { %1984 = vmatpush3.bf16.msra.mxu1 %v2122_v63  ;;  %1963 = vmatprep.subr.bf16.mxu0 %v2123_v1 }
  0x88   :  { %1985 = vmatprep.subr.bf16.mxu1 %v2124_v2 }
  0x8a   :  { %1964 = vmatpush3.bf16.msra.mxu0 %v2125_v3 }
  0x8b   :  { %1986 = vmatpush3.bf16.msra.mxu1 %v2126_v4  ;;  %1965 = vmatprep.subr.bf16.mxu0 %v2127_v5 }
  0x8c   :  { %1987 = vmatprep.subr.bf16.mxu1 %v2128_v6 }
  0x8e   :  { %1966 = vmatpush3.bf16.msra.mxu0 %v2129_v7 }
  0x8f   :  { %1988 = vmatpush3.bf16.msra.mxu1 %v2130_v8  ;;  %1967 = vmatprep.subr.bf16.mxu0 %v2131_v9 }
  0x90   :  { %1989 = vmatprep.subr.bf16.mxu1 %v2132_v10 }
  0x92   :  { %1968 = vmatpush3.bf16.msra.mxu0 %v2133_v11 }
  0x93   :  { %1990 = vmatpush3.bf16.msra.mxu1 %v2134_v12  ;;  %1969 = vmatprep.subr.bf16.mxu0 %v2135_v13 }
  0x94   :  { %1991 = vmatprep.subr.bf16.mxu1 %v2136_v14 }
  0x96   :  { %1970 = vmatpush3.bf16.msra.mxu0 %v2137_v15 }
  0x97   :  { %1992 = vmatpush3.bf16.msra.mxu1 %v2138_v16  ;;  %1971 = vmatprep.subr.bf16.mxu0 %v2139_v17 }
  0x98   :  { %1993 = vmatprep.subr.bf16.mxu1 %v2140_v18 }
  0x9a   :  { %1972 = vmatpush3.bf16.msra.mxu0 %v2141_v19 }
  0x9b   :  { %1994 = vmatpush3.bf16.msra.mxu1 %v2142_v20  ;;  %1973 = vmatprep.subr.bf16.mxu0 %v2143_v21 }
  0x9c   :  { %1995 = vmatprep.subr.bf16.mxu1 %v2144_v22 }
  0x9e   :  { %1974 = vmatpush3.bf16.msra.mxu0 %v2145_v23 }
  0x9f   :  { %1996 = vmatpush3.bf16.msra.mxu1 %v2146_v24 }
  0xa1   :  { %1581 = vmatmul.mubr.bf16.vlgmr.msra.gmra.mxu0 %v2220_v0 }
  0xa2   :  { %1622 = vmatmul.mubr.bf16.vlgmr.msra.gmra.mxu1 %v2220_v0  ;;  %v1635_v0 = vld [vmem:[#allocation2] sm:$0xff] }
  0xa3   :  { %1639 = vperm.xlu0 %2018, %v1635_v0  }
  0xa7   :  { %1644 = vperm.xlu0 %2018, %v1636_v30  }
 0x101   :  { %v1843_v31 = vpop.f32.mrf.mxu0 }
 0x102   :  { %v1865_v32 = vpop.f32.mrf.mxu1 }
 0x103   :  { %v1844_v33 = vpop.f32.mrf.mxu0 }
 0x104   :  { %v1866_v34 = vpop.f32.mrf.mxu1  ;;  %v1845_v49 = vadd.f32 %v1844_v33, %v1843_v31  ;;  %v1667_v31 = vpop.permute.xlu1 %1666 }
 0x105   :  { %v1846_v35 = vpop.f32.mrf.mxu0  ;;  %v1867_v50 = vadd.f32 %v1866_v34, %v1865_v32 }
 0x106   :  { %v1868_v36 = vpop.f32.mrf.mxu1 }
 0x107   :  { %v1847_v37 = vpop.f32.mrf.mxu0  ;;  %v1378_v54 = vadd.f32 %v1867_v50, %v1845_v49 }
 0x108   :  { %v1869_v38 = vpop.f32.mrf.mxu1  ;;  %v1848_v55 = vadd.f32 %v1847_v37, %v1846_v35  ;;  %v1672_v33 = vpop.permute.xlu1 %1671 }
 0x109   :  { %v1870_v56 = vadd.f32 %v1869_v38, %v1868_v36 }
 0x10b   :  { %v1381_v62 = vadd.f32 %v1870_v56, %v1848_v55 }
 0x11e   :  { %v1640_v30 = vpop.permute.xlu0 %1639 }
 0x121   :  { %v1887_v39 = vpop.f32.mrf.mxu0 }
 0x122   :  { %v1909_v40 = vpop.f32.mrf.mxu1  ;;  %v1645_v32 = vpop.permute.xlu0 %1644 }
 0x123   :  { %v1888_v41 = vpop.f32.mrf.mxu0 }
 0x124   :  { %v1910_v42 = vpop.f32.mrf.mxu1  ;;  %v1889_v53 = vadd.f32 %v1888_v41, %v1887_v39 }
 0x125   :  { %v1890_v43 = vpop.f32.mrf.mxu0  ;;  %v1911_v60 = vadd.f32 %v1910_v42, %v1909_v40 }
 0x126   :  { %v1912_v44 = vpop.f32.mrf.mxu1  ;;  %v1419_v59 = vadd.f32 %v1889_v53, %v1378_v54 }
 0x127   :  { %v1891_v45 = vpop.f32.mrf.mxu0 }
 0x128   :  { %v1913_v46 = vpop.f32.mrf.mxu1  ;;  %v1892_v61 = vadd.f32 %v1891_v45, %v1890_v43  ;;  %v1460_v3 = vadd.f32 %v1911_v60, %v1419_v59 }
 0x129   :  { %v1914_v6 = vadd.f32 %v1913_v46, %v1912_v44 }
 0x12a   :  { %v1422_v4 = vadd.f32 %v1892_v61, %v1381_v62 }
 0x12c   :  { %v1463_v12 = vadd.f32 %v1914_v6, %v1422_v4 }
 0x141   :  { %v1931_v47 = vpop.f32.mrf.mxu0 }
 0x142   :  { %v1953_v48 = vpop.f32.mrf.mxu1 }
 0x143   :  { %v1932_v51 = vpop.f32.mrf.mxu0 }
 0x144   :  { %v1954_v52 = vpop.f32.mrf.mxu1  ;;  %v1933_v63 = vadd.f32 %v1932_v51, %v1931_v47 }
 0x145   :  { %v1934_v57 = vpop.f32.mrf.mxu0  ;;  %v1955_v8 = vadd.f32 %v1954_v52, %v1953_v48 }
 0x146   :  { %v1956_v58 = vpop.f32.mrf.mxu1  ;;  %v1501_v7 = vadd.f32 %v1933_v63, %v1460_v3 }
 0x147   :  { %v1935_v1 = vpop.f32.mrf.mxu0 }
 0x148   :  { %v1957_v2 = vpop.f32.mrf.mxu1  ;;  %v1936_v9 = vadd.f32 %v1935_v1, %v1934_v57  ;;  %v1542_v15 = vadd.f32 %v1955_v8, %v1501_v7 }
 0x149   :  { %v1958_v19 = vadd.f32 %v1957_v2, %v1956_v58 }
 0x14a   :  { %v1504_v16 = vadd.f32 %v1936_v9, %v1463_v12 }
 0x14c   :  { %v1545_v24 = vadd.f32 %v1958_v19, %v1504_v16 }
 0x161   :  { %v1975_v10 = vpop.f32.mrf.mxu0 }
 0x162   :  { %v1997_v5 = vpop.f32.mrf.mxu1 }
 0x163   :  { %v1976_v13 = vpop.f32.mrf.mxu0 }
 0x164   :  { %v1998_v11 = vpop.f32.mrf.mxu1  ;;  %v1977_v17 = vadd.f32 %v1976_v13, %v1975_v10 }
 0x165   :  { %v1978_v18 = vpop.f32.mrf.mxu0  ;;  %v1999_v21 = vadd.f32 %v1998_v11, %v1997_v5 }
 0x166   :  { %v2000_v14 = vpop.f32.mrf.mxu1  ;;  %v1583_v20 = vadd.f32 %v1977_v17, %v1542_v15 }
 0x167   :  { %v1979_v22 = vpop.f32.mrf.mxu0 }
 0x168   :  { %v2001_v23 = vpop.f32.mrf.mxu1  ;;  %v1624_v25 = vadd.f32 %v1999_v21, %v1583_v20  ;;  %v1980_v26 = vadd.f32 %v1979_v22, %v1978_v18 }
 0x169   :  { %v2002_v29 = vadd.f32 %v2001_v23, %v2000_v14 }
 0x16a   :  { %v1586_v28 = vadd.f32 %v1980_v26, %v1545_v24  ;;  %1630 = vrot.lane.b32.xlu0 %v1624_v25, %s2223_s1 }
 0x16c   :  { %v1627_v0 = vadd.f32 %v2002_v29, %v1586_v28 }
 0x16e   :  { %1632 = vrot.lane.b32.xlu1 %v1627_v0, %s2223_s1  ;;  %1651 = vrot.lane.b32.xlu0 %v1624_v25, %s2223_s1 }
 0x172   :  { %1653 = vrot.lane.b32.xlu1 %v1627_v0, %s2223_s1 }
 0x1dc   :  { %v1631_v34 = vpop.permute.xlu0 %1630 }
 0x1dd   :  { %v1647_v35 = vsel %vm1634_vm3, %v1640_v30, %v1631_v34 }
 0x1de   :  { %v1660_v36 = vadd.f32 %v1647_v35, %v1624_v25 }
 0x1e0   :  { %v1674_v37 = vmul.f32 %v1667_v31, %v1660_v36  ;;  %v1633_v38 = vpop.permute.xlu1 %1632  ;;  %v1652_v39 = vpop.permute.xlu0 %1651 }
 0x1e1   :  { %v1648_v40 = vsel %vm1634_vm3, %v1645_v32, %v1633_v38  ;;  %1658 = vst.msk [vmem:[#allocation2] sm:$0xff] %vm48_vm2, %v1652_v39 }
 0x1e2   :  { %1676 = vst [vmem:[#allocation8] sm:$0xff] %v1674_v37  ;;  %v1661_v41 = vadd.f32 %v1648_v40, %v1627_v0 }
 0x1e4   :  { %v1675_v42 = vmul.f32 %v1672_v33, %v1661_v41  ;;  %v1654_v43 = vpop.permute.xlu1 %1653 }
 0x1e5   :  { %1659 = vst.msk [vmem:[#allocation2 + $0x8] sm:$0xff] %vm48_vm2, %v1654_v43 }
 0x1e6   :  { %1677 = vst [vmem:[#allocation8 + $0x8] sm:$0xff] %v1675_v42 }
 0x1e7   :  { %2198 = shalt.err (!%p2195_p0)
}
 0x1e8   :  { %s2225_s6 = smov 128   ;;  %s2226_s7 = smov 8  }
 0x1e9   :  { %1689 = dma.vmem_to_hbm [thread:$0]  %s1684_s4, 256, %s2289_s3, [#allocation5], %s2225_s6, %s2225_s6, %s2226_s7  }
 0x1ea   :  { %2211 = dma.done.wait [#allocation5], 256  }
 0x1eb   :  { %2212 = vsyncadd [#allocation5], 4294967040 }
 0x1ec   :  { %1693 = vsyncpa [#allocation4], 1 }
 0x1ed   :  { %1694 = vsyncpa [#allocation7], 1 }
 0x1ee   :  { %1695 = vsyncpa [#allocation5], 1 }

</bundles_post_ra>
